<compile_context>
chip_gen: v7x
topology: tpu7x:2x2x1
jax: 0.10.0
libtpu: 0.0.40
codegen_flags: <defaults>
</compile_context>

<pallas_src>
import functools

import jax
import jax.numpy as jnp
from jax.experimental import pallas as pl
from jax.experimental.pallas import tpu as pltpu


def _round_up(x, m):
    return ((x + m - 1) // m) * m


def _world_model_kernel(num_hidden, belief_ref, latent_ref, *refs):
    """Fused MLP over one batch tile.

    refs layout:
      w1_belief, w1_latent, b1,
      w2, b2, ..., w_{num_hidden}, b_{num_hidden},
      w_out, b_out, out_ref
    Weights are bf16 (padded, VMEM-resident); biases f32; accumulation f32.
    """
    out_ref = refs[-1]
    layer_refs = refs[:-1]
    compute_dtype = layer_refs[0].dtype

    # Layer 1: fused concat -> split-weight matmul (belief@W1_b + latent@W1_l).
    w1b_ref, w1l_ref, b1_ref = layer_refs[0], layer_refs[1], layer_refs[2]
    z = (jnp.dot(belief_ref[...], w1b_ref[...], preferred_element_type=jnp.float32)
         + jnp.dot(latent_ref[...], w1l_ref[...], preferred_element_type=jnp.float32)
         + b1_ref[...])
    h = jnp.maximum(z, 0.0).astype(compute_dtype)
    # Dropout(p=0.2) is identity in eval mode.
    # TODO(synk): training-mode dropout (pltpu.prng_* stochastic mask) not implemented.

    # Hidden layers 2..num_hidden.
    idx = 3
    for _ in range(num_hidden - 1):
        w_ref, b_ref = layer_refs[idx], layer_refs[idx + 1]
        idx += 2
        z = jnp.dot(h, w_ref[...], preferred_element_type=jnp.float32) + b_ref[...]
        h = jnp.maximum(z, 0.0).astype(compute_dtype)

    # Output projection (no activation).
    w_out_ref, b_out_ref = layer_refs[idx], layer_refs[idx + 1]
    out = jnp.dot(h, w_out_ref[...], preferred_element_type=jnp.float32) + b_out_ref[...]
    out_ref[...] = out.astype(out_ref.dtype)


def world_model_forward(belief, latent, params, *, num_hidden, tile_b=128,
                        compute_dtype=jnp.bfloat16):
    """Runs the WorldModel forward pass with a single fused, batch-tiled Pallas kernel.

    params (f32, PyTorch-Linear layout transposed to (in, out)):
      'w1': (emb+latent, num_units), 'b1': (1, num_units)
      'w{i}': (num_units, num_units), 'b{i}': (1, num_units) for i in 2..num_hidden
      'w_out': (num_units, obs_dim), 'b_out': (1, obs_dim)
    """
    assert num_hidden >= 1
    B = belief.shape[0]
    emb_dim = belief.shape[1]
    latent_dim = latent.shape[1]
    num_units = params["w1"].shape[1]
    obs_dim = params["w_out"].shape[1]

    # Pad feature dims to lane width (128); batch to a bf16-friendly sublane tile.
    emb_p = _round_up(emb_dim, 128)
    lat_p = _round_up(latent_dim, 128)
    u_p = _round_up(num_units, 128)
    o_p = _round_up(obs_dim, 128)

    tile_b = max(16, min(tile_b, _round_up(B, 16)))
    tile_b = _round_up(tile_b, 16)
    b_p = _round_up(B, tile_b)

    itemsize = jnp.dtype(compute_dtype).itemsize

    # Activations: zero-padded, cast to compute dtype. No HBM concat needed.
    belief_p = jnp.pad(belief, ((0, b_p - B), (0, emb_p - emb_dim))).astype(compute_dtype)
    latent_p = jnp.pad(latent, ((0, b_p - B), (0, lat_p - latent_dim))).astype(compute_dtype)

    def pad_w(w, rows, cols):
        return jnp.pad(w, ((0, rows - w.shape[0]), (0, cols - w.shape[1]))).astype(compute_dtype)

    def pad_b(b, cols):
        return jnp.pad(b, ((0, 0), (0, cols - b.shape[1]))).astype(jnp.float32)

    # Split W1 row-wise so concat(x)@W1 == belief@W1_top + latent@W1_bottom.
    w1 = params["w1"]
    layers = [
        pad_w(w1[:emb_dim, :], emb_p, u_p),
        pad_w(w1[emb_dim:, :], lat_p, u_p),
        pad_b(params["b1"], u_p),
    ]
    for i in range(2, num_hidden + 1):
        layers.append(pad_w(params[f"w{i}"], u_p, u_p))
        layers.append(pad_b(params[f"b{i}"], u_p))
    layers.append(pad_w(params["w_out"], u_p, o_p))
    layers.append(pad_b(params["b_out"], o_p))

    inputs = [belief_p, latent_p] + layers

    # Activation tiles march along the batch axis; weights/biases are resident
    # (constant block index -> DMA'd once, reused on every grid step).
    in_specs = [
        pl.BlockSpec((tile_b, emb_p), lambda i: (i, 0)),
        pl.BlockSpec((tile_b, lat_p), lambda i: (i, 0)),
    ]
    for arr in layers:
        in_specs.append(pl.BlockSpec(arr.shape, lambda i: (0, 0)))
    out_specs = pl.BlockSpec((tile_b, o_p), lambda i: (i, 0))

    grid = (b_p // tile_b,)

    # Advisory cost estimate for XLA scheduling around this (microsecond) kernel.
    flops = 2 * b_p * (emb_p * u_p + lat_p * u_p
                       + (num_hidden - 1) * u_p * u_p + u_p * o_p)
    bytes_accessed = (sum(int(a.size) * a.dtype.itemsize for a in inputs)
                      + b_p * o_p * 4)
    cost = pl.CostEstimate(flops=int(flops), transcendentals=0,
                           bytes_accessed=int(bytes_accessed))

    # Explicit VMEM budget: weights (counted double-buffered to be safe) +
    # pipelined activation/output tiles + intermediate-activation headroom;
    # clamped well under v7x's 64 MiB per-core VMEM.
    weight_bytes = sum(int(a.size) * a.dtype.itemsize for a in layers)
    act_bytes = 2 * tile_b * (emb_p + lat_p) * itemsize + 2 * tile_b * o_p * 4
    scratch_bytes = 2 * tile_b * u_p * 4
    vmem_limit = 2 * weight_bytes + act_bytes + scratch_bytes + (8 << 20)
    vmem_limit = int(min(vmem_limit, 56 << 20))

    kernel = functools.partial(_world_model_kernel, num_hidden)
    out = pl.pallas_call(
        kernel,
        out_shape=jax.ShapeDtypeStruct((b_p, o_p), jnp.float32),
        grid=grid,
        in_specs=in_specs,
        out_specs=out_specs,
        compiler_params=pltpu.CompilerParams(
            dimension_semantics=("parallel",),
            vmem_limit_bytes=vmem_limit,
        ),
        cost_estimate=cost,
    )(*inputs)

    # Zero-padding is exact: slice back to the logical output.
    return out[:B, :obs_dim]


def init_params(key, obs_dim, emb_dim, latent_dim, num_hidden, num_units):
    """PyTorch-Linear-style init: U(-1/sqrt(fan_in), 1/sqrt(fan_in)), f32 master copy."""
    params = {}
    dims_in = [emb_dim + latent_dim] + [num_units] * (num_hidden - 1)
    dims_out = [num_units] * num_hidden
    keys = jax.random.split(key, num_hidden + 1)

    for i, (din, dout) in enumerate(zip(dims_in, dims_out), start=1):
        kw, kb = jax.random.split(keys[i - 1])
        bound = 1.0 / jnp.sqrt(din)
        params[f"w{i}"] = jax.random.uniform(kw, (din, dout), jnp.float32, -bound, bound)
        params[f"b{i}"] = jax.random.uniform(kb, (1, dout), jnp.float32, -bound, bound)

    kw, kb = jax.random.split(keys[-1])
    bound = 1.0 / jnp.sqrt(num_units)
    params["w_out"] = jax.random.uniform(kw, (num_units, obs_dim), jnp.float32, -bound, bound)
    params["b_out"] = jax.random.uniform(kb, (1, obs_dim), jnp.float32, -bound, bound)
    return params


def reference_forward(belief, latent, params, *, num_hidden, compute_dtype=jnp.bfloat16):
    """Plain-JAX reference (explicit concat) with matching bf16/f32-acc numerics."""
    x = jnp.concatenate([belief, latent], axis=1).astype(compute_dtype)
    for i in range(1, num_hidden + 1):
        w = params[f"w{i}"].astype(compute_dtype)
        z = jnp.dot(x, w, preferred_element_type=jnp.float32) + params[f"b{i}"]
        x = jnp.maximum(z, 0.0).astype(compute_dtype)
    w = params["w_out"].astype(compute_dtype)
    return jnp.dot(x, w, preferred_element_type=jnp.float32) + params["b_out"]


if __name__ == "__main__":
    # Small shapes consistent with the module; batch spans multiple grid tiles.
    batch = 64
    obs_dim = 16
    emb_dim = 32
    latent_dim = 32
    num_hidden = 2
    num_units = 64
    tile_b = 32   # 2 batch tiles -> pipelined grid; real deployments use 128-256.

    key = jax.random.PRNGKey(0)
    k_b, k_l, k_p = jax.random.split(key, 3)
    belief = jax.random.normal(k_b, (batch, emb_dim), jnp.float32)
    latent = jax.random.normal(k_l, (batch, latent_dim), jnp.float32)
    params = init_params(k_p, obs_dim, emb_dim, latent_dim, num_hidden, num_units)

    out = world_model_forward(belief, latent, params, num_hidden=num_hidden, tile_b=tile_b)
    out = jax.block_until_ready(out)

    ref = reference_forward(belief, latent, params, num_hidden=num_hidden)
    assert out.shape == (batch, obs_dim), out.shape
    max_err = float(jnp.max(jnp.abs(out - ref)))
    assert jnp.allclose(out, ref, atol=3e-2, rtol=3e-2), max_err

    print("KERNEL_OK")
</pallas_src>

<mosaic_0001>
module attributes {stable_mosaic.version = 11 : i64} {
  func.func @_world_model_kernel(%arg0: i32, %arg1: memref<32x128xbf16, #tpu.memory_space<vmem>>, %arg2: memref<32x128xbf16, #tpu.memory_space<vmem>>, %arg3: memref<128x128xbf16, #tpu.memory_space<vmem>>, %arg4: memref<128x128xbf16, #tpu.memory_space<vmem>>, %arg5: memref<1x128xf32, #tpu.memory_space<vmem>>, %arg6: memref<128x128xbf16, #tpu.memory_space<vmem>>, %arg7: memref<1x128xf32, #tpu.memory_space<vmem>>, %arg8: memref<128x128xbf16, #tpu.memory_space<vmem>>, %arg9: memref<1x128xf32, #tpu.memory_space<vmem>>, %arg10: memref<32x128xf32, #tpu.memory_space<vmem>>) attributes {dimension_semantics = [#tpu.dimension_semantics<parallel>], iteration_bounds = array<i64: 2>, scalar_prefetch = 0 : i64, scratch_operands = 0 : i64, tpu.core_type = #tpu.core_type<tc>, window_params = [{transform_indices = @transform_0, window_bounds = array<i64: 32, 128>}, {transform_indices = @transform_1, window_bounds = array<i64: 32, 128>}, {pipeline_mode = #tpu.pipeline_mode<synchronous>, transform_indices = @transform_2, window_bounds = array<i64: 128, 128>}, {pipeline_mode = #tpu.pipeline_mode<synchronous>, transform_indices = @transform_3, window_bounds = array<i64: 128, 128>}, {pipeline_mode = #tpu.pipeline_mode<synchronous>, transform_indices = @transform_4, window_bounds = array<i64: 1, 128>}, {pipeline_mode = #tpu.pipeline_mode<synchronous>, transform_indices = @transform_5, window_bounds = array<i64: 128, 128>}, {pipeline_mode = #tpu.pipeline_mode<synchronous>, transform_indices = @transform_6, window_bounds = array<i64: 1, 128>}, {pipeline_mode = #tpu.pipeline_mode<synchronous>, transform_indices = @transform_7, window_bounds = array<i64: 128, 128>}, {pipeline_mode = #tpu.pipeline_mode<synchronous>, transform_indices = @transform_8, window_bounds = array<i64: 1, 128>}, {transform_indices = @transform_9, window_bounds = array<i64: 32, 128>}]} {
    %c0 = arith.constant 0 : index
    %c0_0 = arith.constant 0 : index
    %0 = vector.load %arg1[%c0, %c0_0] : memref<32x128xbf16, #tpu.memory_space<vmem>>, vector<32x128xbf16>
    %c0_1 = arith.constant 0 : index
    %c0_2 = arith.constant 0 : index
    %1 = vector.load %arg3[%c0_1, %c0_2] : memref<128x128xbf16, #tpu.memory_space<vmem>>, vector<128x128xbf16>
    %cst = arith.constant dense<0.000000e+00> : vector<32x128xf32>
    %2 = tpu.matmul %0, %1, %cst {dimension_numbers = #tpu.dot_dimension_numbers<[1], [0], [0], [1], [0, 0, 1, 1], [], []>} : vector<32x128xbf16>, vector<128x128xbf16>, vector<32x128xf32> -> vector<32x128xf32>
    %c0_3 = arith.constant 0 : index
    %c0_4 = arith.constant 0 : index
    %3 = vector.load %arg2[%c0_3, %c0_4] : memref<32x128xbf16, #tpu.memory_space<vmem>>, vector<32x128xbf16>
    %c0_5 = arith.constant 0 : index
    %c0_6 = arith.constant 0 : index
    %4 = vector.load %arg4[%c0_5, %c0_6] : memref<128x128xbf16, #tpu.memory_space<vmem>>, vector<128x128xbf16>
    %cst_7 = arith.constant dense<0.000000e+00> : vector<32x128xf32>
    %5 = tpu.matmul %3, %4, %cst_7 {dimension_numbers = #tpu.dot_dimension_numbers<[1], [0], [0], [1], [0, 0, 1, 1], [], []>} : vector<32x128xbf16>, vector<128x128xbf16>, vector<32x128xf32> -> vector<32x128xf32>
    %6 = arith.addf %2, %5 : vector<32x128xf32>
    %c0_8 = arith.constant 0 : index
    %c0_9 = arith.constant 0 : index
    %7 = vector.load %arg5[%c0_8, %c0_9] : memref<1x128xf32, #tpu.memory_space<vmem>>, vector<1x128xf32>
    %8 = vector.broadcast %7 : vector<1x128xf32> to vector<32x128xf32>
    %9 = arith.addf %6, %8 : vector<32x128xf32>
    %cst_10 = arith.constant 0.000000e+00 : f32
    %10 = vector.broadcast %cst_10 : f32 to vector<32x128xf32>
    %11 = arith.maximumf %9, %10 : vector<32x128xf32>
    %12 = arith.truncf %11 : vector<32x128xf32> to vector<32x128xbf16>
    %c0_11 = arith.constant 0 : index
    %c0_12 = arith.constant 0 : index
    %13 = vector.load %arg6[%c0_11, %c0_12] : memref<128x128xbf16, #tpu.memory_space<vmem>>, vector<128x128xbf16>
    %cst_13 = arith.constant dense<0.000000e+00> : vector<32x128xf32>
    %14 = tpu.matmul %12, %13, %cst_13 {dimension_numbers = #tpu.dot_dimension_numbers<[1], [0], [0], [1], [0, 0, 1, 1], [], []>} : vector<32x128xbf16>, vector<128x128xbf16>, vector<32x128xf32> -> vector<32x128xf32>
    %c0_14 = arith.constant 0 : index
    %c0_15 = arith.constant 0 : index
    %15 = vector.load %arg7[%c0_14, %c0_15] : memref<1x128xf32, #tpu.memory_space<vmem>>, vector<1x128xf32>
    %16 = vector.broadcast %15 : vector<1x128xf32> to vector<32x128xf32>
    %17 = arith.addf %14, %16 : vector<32x128xf32>
    %cst_16 = arith.constant 0.000000e+00 : f32
    %18 = vector.broadcast %cst_16 : f32 to vector<32x128xf32>
    %19 = arith.maximumf %17, %18 : vector<32x128xf32>
    %20 = arith.truncf %19 : vector<32x128xf32> to vector<32x128xbf16>
    %c0_17 = arith.constant 0 : index
    %c0_18 = arith.constant 0 : index
    %21 = vector.load %arg8[%c0_17, %c0_18] : memref<128x128xbf16, #tpu.memory_space<vmem>>, vector<128x128xbf16>
    %cst_19 = arith.constant dense<0.000000e+00> : vector<32x128xf32>
    %22 = tpu.matmul %20, %21, %cst_19 {dimension_numbers = #tpu.dot_dimension_numbers<[1], [0], [0], [1], [0, 0, 1, 1], [], []>} : vector<32x128xbf16>, vector<128x128xbf16>, vector<32x128xf32> -> vector<32x128xf32>
    %c0_20 = arith.constant 0 : index
    %c0_21 = arith.constant 0 : index
    %23 = vector.load %arg9[%c0_20, %c0_21] : memref<1x128xf32, #tpu.memory_space<vmem>>, vector<1x128xf32>
    %24 = vector.broadcast %23 : vector<1x128xf32> to vector<32x128xf32>
    %25 = arith.addf %22, %24 : vector<32x128xf32>
    %c0_22 = arith.constant 0 : index
    %c0_23 = arith.constant 0 : index
    %26 = vector.load %arg10[%c0_22, %c0_23] : memref<32x128xf32, #tpu.memory_space<vmem>>, vector<32x128xf32>
    tpu.vector_store %arg10[%c0_22, %c0_23], %25 {strides = array<i32>} : memref<32x128xf32, #tpu.memory_space<vmem>>, vector<32x128xf32>,
    return
  }
  func.func @transform_0(%arg0: i32) -> (i32, i32) {
    %c0_i32 = arith.constant 0 : i32
    %c0_i32_0 = arith.constant 0 : i32
    return %arg0, %c0_i32 : i32, i32
  }
  func.func @transform_1(%arg0: i32) -> (i32, i32) {
    %c0_i32 = arith.constant 0 : i32
    %c0_i32_0 = arith.constant 0 : i32
    return %arg0, %c0_i32 : i32, i32
  }
  func.func @transform_2(%arg0: i32) -> (i32, i32) {
    %c0_i32 = arith.constant 0 : i32
    %c0_i32_0 = arith.constant 0 : i32
    %c0_i32_1 = arith.constant 0 : i32
    return %c0_i32, %c0_i32_0 : i32, i32
  }
  func.func @transform_3(%arg0: i32) -> (i32, i32) {
    %c0_i32 = arith.constant 0 : i32
    %c0_i32_0 = arith.constant 0 : i32
    %c0_i32_1 = arith.constant 0 : i32
    return %c0_i32, %c0_i32_0 : i32, i32
  }
  func.func @transform_4(%arg0: i32) -> (i32, i32) {
    %c0_i32 = arith.constant 0 : i32
    %c0_i32_0 = arith.constant 0 : i32
    %c0_i32_1 = arith.constant 0 : i32
    return %c0_i32, %c0_i32_0 : i32, i32
  }
  func.func @transform_5(%arg0: i32) -> (i32, i32) {
    %c0_i32 = arith.constant 0 : i32
    %c0_i32_0 = arith.constant 0 : i32
    %c0_i32_1 = arith.constant 0 : i32
    return %c0_i32, %c0_i32_0 : i32, i32
  }
  func.func @transform_6(%arg0: i32) -> (i32, i32) {
    %c0_i32 = arith.constant 0 : i32
    %c0_i32_0 = arith.constant 0 : i32
    %c0_i32_1 = arith.constant 0 : i32
    return %c0_i32, %c0_i32_0 : i32, i32
  }
  func.func @transform_7(%arg0: i32) -> (i32, i32) {
    %c0_i32 = arith.constant 0 : i32
    %c0_i32_0 = arith.constant 0 : i32
    %c0_i32_1 = arith.constant 0 : i32
    return %c0_i32, %c0_i32_0 : i32, i32
  }
  func.func @transform_8(%arg0: i32) -> (i32, i32) {
    %c0_i32 = arith.constant 0 : i32
    %c0_i32_0 = arith.constant 0 : i32
    %c0_i32_1 = arith.constant 0 : i32
    return %c0_i32, %c0_i32_0 : i32, i32
  }
  func.func @transform_9(%arg0: i32) -> (i32, i32) {
    %c0_i32 = arith.constant 0 : i32
    %c0_i32_0 = arith.constant 0 : i32
    return %arg0, %c0_i32 : i32, i32
  }
}

</mosaic_0001>

<bundles_post_ra>
// kernel: tpu_custom_call.1
= control target key start
LH: loop header
LB: loop body
LE: loop exit
PB: predicated region body
PF: predicated region fallthrough
CT: control target
= control target key end

     0   :  { %s2126_s0 = inlined_call_operand.hbm [shape: bf16[64,128], index: 0, kind: input, shape index: {}]   ;;  %s2127_s1 = inlined_call_operand.hbm [shape: bf16[64,128], index: 1, kind: input, shape index: {}]   ;;  %s2128_s2 = inlined_call_operand.hbm [shape: bf16[128,128], index: 2, kind: input, shape index: {}]   ;;  %s2129_s3 = inlined_call_operand.hbm [shape: bf16[128,128], index: 3, kind: input, shape index: {}]   ;;  %s2130_s4 = inlined_call_operand.vmem [shape: f32[1,128], index: 4, kind: input, shape index: {}]   ;;  %s2131_s5 = inlined_call_operand.hbm [shape: bf16[128,128], index: 5, kind: input, shape index: {}]   ;;  %s2132_s6 = inlined_call_operand.vmem [shape: f32[1,128], index: 6, kind: input, shape index: {}]   ;;  %s2133_s7 = inlined_call_operand.hbm [shape: bf16[128,128], index: 7, kind: input, shape index: {}]   ;;  %s2134_s8 = inlined_call_operand.vmem [shape: f32[1,128], index: 8, kind: input, shape index: {}]   ;;  %s2135_s9 = inlined_call_operand.hbm [shape: f32[64,128], index: 9, kind: output, shape index: {}]  }
   0x1   :  { %2146 = sst [smem:[#allocation22_spill]] %s2126_s0 }
   0x2   :  { %2147 = sst [smem:[#allocation23_spill]] %s2128_s2 }
   0x3   :  { %2148 = sst [smem:[#allocation24_spill]] %s2129_s3 }
   0x4   :  { %2149 = sst [smem:[#allocation25_spill]] %s2135_s9 }
   0x5   :  { %14 = vsyncpa [#allocation3], 0 }
   0x6   :  { %16 = vsyncpa [#allocation3 + $0x1], 0 }
   0x7   :  { %17 = vsyncpa [#allocation6], 0 }
   0x8   :  { %19 = vsyncpa [#allocation6 + $0x1], 0 }
   0x9   :  { %20 = vsyncpa [#allocation9], 0 }
   0xa   :  { %21 = vsyncpa [#allocation12], 0 }
   0xb   :  { %22 = vsyncpa [#allocation4], 0 }
   0xc   :  { %24 = vsyncpa [#allocation4 + $0x1], 0  ;;  %s1767_s30 = smov 0   ;;  %s1769_s10 = smov 0  }
   0xd   :  { %s1771_s11 = smov 0   ;;  %s1773_s12 = smov 0  }
   0xe LB: > { %2150 = sst [smem:[#allocation20_spill]] %s1692_s30  ;;  %s1788_s13 = sadd.s32 4294967295, %s1704_s12   ;;  %s1704_s12 = sphi %s1773_s12, %s2181_s12   ;;  %s1700_s11 = sphi %s1771_s11, %s2180_s11   ;;  %s1696_s10 = sphi %s1769_s10, %s2179_s10   ;;  %s1692_s30 = sphi %s1767_s30, %s2178_s30  }
   0xf   : > { %s1126_s14 = sadd.s32 4294967294, %s1704_s12   ;;  %p50_p0 = scmp.ne.s32.totalorder %s1696_s10, %s1692_s30 }
  0x10   : > { %p2136_p1 = scmp.eq.s32.totalorder %s1788_s13, 0  ;;  %p253_p3 = scmp.eq.s32.totalorder %s1126_s14, 1 }
  0x11   : > { %p1127_p5 = scmp.ge.s32.totalorder %s1704_s12, 1  ;;  %p260_p7 = scmp.lt.s32.totalorder %s1704_s12, 3 }
  0x12   : > { %p1797_p4 = por %p2136_p1, %p50_p0  ;;  %p1802_p6 = por %p253_p3, %p50_p0 }
  0x13   : > { %p1807_p8 = pnand %p1127_p5, %p260_p7  ;;  %s1706_s18 = smov [#allocation7]  }
  0x14   : > { %s2151_s15 = scalar_select %p1797_p4, 1, 0 }
  0x15   : > { %s2152_s16 = scalar_select %p1802_p6, 1, 0 }
  0x16   : > { %s2154_s17 = scalar_select %p1807_p8, 1, 0 }
  0x17   : > { %2153 = sst [smem:[#allocation21_spill]] %s2152_s16  ;;  %s272_s19 = sshll.u32 %s1706_s18, 4  ;;  %s1811_s19 = int_to_ptr.vmem [resolvable:$true] %s272_s19 }
  0x18   : > { %p1340_p9 = pneg %p1807_p8  ;;  %s1707_s21 = smov [#allocation8]  }
  0x19   : > { %s285_s22 = sshll.u32 %s1707_s21, 4  ;;  %s1708_s23 = smov [#allocation10]   ;;  %s1822_s22 = int_to_ptr.vmem [resolvable:$true] %s285_s22 }
  0x1a   : > { %p1818_p11 = pnand %p1340_p9, %p2136_p1  ;;  %s1824_s24 = sshll.u32 %s1708_s23, 4  ;;  %s302_s24 = int_to_ptr.vmem [resolvable:$true] %s1824_s24 }
  0x1b   : > { %s2156_s2 = sld [smem:[#allocation23_spill]] }
  0x1c   : > { %p1834_p13 = pneg %p1818_p11 }
  0x21   : > { %s1450_s27 = scalar_lea.hbm %s2156_s2, 1024 }
  0x22   : > { %p1451_p12 = scmp.ne.s32.totalorder %s2156_s2, %s1450_s27  ;;  %p1457_p5 = scmp.lt.u32.totalorder %s1450_s27, %s2156_s2 }
  0x24   : > { %p1453_p0 = pnand %p1834_p13, %p1451_p12 }
  0x26   : > { %p1454_p3 = pneg %p1453_p0 }
  0x28   : > { %p1459_p7 = pnand %p1457_p5, %p1454_p3 }
  0x2a   : > { %1462 = shalt.err (!%p1459_p7)
}
  0x2b   : > { %s1463_s23 = scalar_lea.vmem %s1811_s19, 1024  ;;  %p1471_p2 = scmp.lt.s32.totalorder %s1811_s19, %s1811_s19 }
  0x2c   : > { %p1464_p9 = scmp.ne.s32.totalorder %s1811_s19, %s1463_s23  ;;  %p1472_p6 = scmp.lt.s32.totalorder %s1463_s23, %s1463_s23 }
  0x2e   : > { %p1466_p10 = pnand %p1464_p9, %p1834_p13  ;;  %p1473_p12 = por %p1472_p6, %p1471_p2 }
  0x30   : > { %p1467_p1 = pneg %p1466_p10 }
  0x32   : > { %p1474_p0 = pnand %p1473_p12, %p1467_p1 }
  0x34   : > { %1477 = shalt.err (!%p1474_p0)
}
  0x35   : > { %s2142_s25 = smov 64   ;;  %s2144_s26 = smov 4  }
  0x36   : > { %1343 = dma.hbm_to_vmem [thread:$0]  (!%p1818_p11), %s2156_s2, 1024, %s1811_s19, [#allocation6], %s2142_s25, %s2142_s25, %s2144_s26  }
  0x37   : > { %s2158_s3 = sld [smem:[#allocation24_spill]] }
  0x3d   : > { %s1478_s21 = scalar_lea.hbm %s2158_s3, 1024 }
  0x3e   : > { %p1479_p1 = scmp.ne.s32.totalorder %s2158_s3, %s1478_s21  ;;  %p1485_p10 = scmp.lt.u32.totalorder %s1478_s21, %s2158_s3 }
  0x40   : > { %p1481_p2 = pnand %p1479_p1, %p1834_p13 }
  0x42   : > { %p1482_p6 = pneg %p1481_p2 }
  0x44   : > { %p1487_p3 = pnand %p1485_p10, %p1482_p6 }
  0x46   : > { %1490 = shalt.err (!%p1487_p3)
}
  0x47   : > { %s1491_s19 = scalar_lea.vmem %s1822_s22, 1024  ;;  %p1499_p12 = scmp.lt.s32.totalorder %s1822_s22, %s1822_s22 }
  0x48   : > { %p1492_p5 = scmp.ne.s32.totalorder %s1822_s22, %s1491_s19  ;;  %p1500_p0 = scmp.lt.s32.totalorder %s1491_s19, %s1491_s19 }
  0x4a   : > { %p1494_p7 = pnand %p1492_p5, %p1834_p13  ;;  %p1501_p1 = por %p1500_p0, %p1499_p12 }
  0x4c   : > { %p1495_p9 = pneg %p1494_p7 }
  0x4e   : > { %p1502_p2 = pnand %p1501_p1, %p1495_p9 }
  0x50   : > { %1505 = shalt.err (!%p1502_p2)
}
  0x51   : > { %1346 = dma.hbm_to_vmem [thread:$0]  (!%p1818_p11), %s2158_s3, 1024, %s1822_s22, [#allocation9], %s2142_s25, %s2142_s25, %s2144_s26  }
  0x52   : > { %s1506_s28 = scalar_lea.hbm %s2131_s5, 1024 }
  0x53   : > { %p1507_p6 = scmp.ne.s32.totalorder %s2131_s5, %s1506_s28  ;;  %p1513_p5 = scmp.lt.u32.totalorder %s1506_s28, %s2131_s5 }
  0x55   : > { %p1509_p10 = pnand %p1507_p6, %p1834_p13 }
  0x57   : > { %p1510_p3 = pneg %p1509_p10 }
  0x59   : > { %p1515_p7 = pnand %p1513_p5, %p1510_p3 }
  0x5b   : > { %1518 = shalt.err (!%p1515_p7)
}
  0x5c   : > { %s1519_s19 = scalar_lea.vmem %s302_s24, 1024  ;;  %p1527_p1 = scmp.lt.s32.totalorder %s302_s24, %s302_s24 }
  0x5d   : > { %p1520_p9 = scmp.ne.s32.totalorder %s302_s24, %s1519_s19  ;;  %p1528_p2 = scmp.lt.s32.totalorder %s1519_s19, %s1519_s19 }
  0x5f   : > { %p1522_p12 = pnand %p1520_p9, %p1834_p13  ;;  %p1529_p4 = por %p1528_p2, %p1527_p1 }
  0x61   : > { %p1523_p0 = pneg %p1522_p12 }
  0x63   : > { %p1530_p8 = pnand %p1529_p4, %p1523_p0 }
  0x65   : > { %1533 = shalt.err (!%p1530_p8)
}
  0x66   : > { %1349 = dma.hbm_to_vmem [thread:$0]  (!%p1818_p11), %s2131_s5, 1024, %s302_s24, [#allocation9], %s2142_s25, %s2142_s25, %s2144_s26  }
  0x67   : > { %s1711_s30 = smov [#allocation11]   ;;  %s1534_s29 = scalar_lea.hbm %s2133_s7, 1024 }
  0x68   : > { %s317_s16 = sshll.u32 %s1711_s30, 4  ;;  %p1535_p4 = scmp.ne.s32.totalorder %s2133_s7, %s1534_s29  ;;  %s318_s16 = int_to_ptr.vmem [resolvable:$true] %s317_s16 }
  0x69   : > { %p1541_p10 = scmp.lt.u32.totalorder %s1534_s29, %s2133_s7 }
  0x6a   : > { %p1537_p8 = pnand %p1535_p4, %p1834_p13 }
  0x6c   : > { %p1538_p6 = pneg %p1537_p8 }
  0x6e   : > { %p1543_p3 = pnand %p1541_p10, %p1538_p6 }
  0x70   : > { %1546 = shalt.err (!%p1543_p3)
}
  0x71   : > { %s1547_s24 = scalar_lea.vmem %s318_s16, 1024  ;;  %p1555_p12 = scmp.lt.s32.totalorder %s318_s16, %s318_s16 }
  0x72   : > { %p1548_p5 = scmp.ne.s32.totalorder %s318_s16, %s1547_s24  ;;  %p1556_p0 = scmp.lt.s32.totalorder %s1547_s24, %s1547_s24 }
  0x74   : > { %p1550_p7 = pnand %p1548_p5, %p1834_p13  ;;  %p1557_p1 = por %p1556_p0, %p1555_p12 }
  0x76   : > { %p1551_p9 = pneg %p1550_p7 }
  0x78   : > { %p1558_p2 = pnand %p1557_p1, %p1551_p9 }
  0x7a   : > { %1561 = shalt.err (!%p1558_p2)
}
  0x7b   : > { %1352 = dma.hbm_to_vmem [thread:$0]  (!%p1818_p11), %s2133_s7, 1024, %s318_s16, [#allocation12], %s2142_s25, %s2142_s25, %s2144_s26  }
  0x7c   : > { %s1928_s14 = sadd.s32 1, %s1704_s12   ;;  %s37_s20 = sadd.s32 1, %s1700_s11 }
  0x7d   : > { %s34_s30 = ssub.s32 %s1704_s12, %s1928_s14  ;;  %p44_p13 = scmp.ne.s32.totalorder %s1700_s11, %s1696_s10 }
  0x7e   : > { %p35_p4 = scmp.eq.s32.totalorder %s34_s30, 0  ;;  %p45_p8 = scmp.eq.s32.totalorder %s1704_s12, 0 }
  0x7f   : > { %p2159_p6 = scmp.eq.s32.totalorder %s1788_s13, 1  ;;  %p1368_p3 = scmp.lt.s32.totalorder %s1704_s12, 2 }
  0x80   : > { %s1944_s28 = scalar_select %p35_p4, %s1700_s11, %s37_s20  }
  0x81   : > { %p1938_p10 = por %p2159_p6, %p44_p13  ;;  %p46_p5 = por %p45_p8, %p44_p13 }
  0x82   : > { %s334_s29 = sand.u32 1, %s1700_s11   ;;  %s1191_s16 = sshll.u32 %s1704_s12, 8 }
  0x83   : > { %s1133_s18 = sshll.u32 %s334_s29, 4  ;;  %s2161_s0 = sld [smem:[#allocation22_spill]] }
  0x84   : > { %s338_s24 = scalar_lea.vmem [#allocation2], %s1133_s18  ;;  %p1955_p11 = pnand %p1368_p3, %p46_p5 }
  0x85   : > { %s345_s22 = sshll.u32 %s338_s24, 4  ;;  %s1962_s21 = scalar_lea.hbm %s2127_s1, %s1191_s16  ;;  %s1953_s22 = int_to_ptr.vmem [resolvable:$true] %s345_s22 }
  0x86   : > { %s359_s23 = scalar_lea.vmem [#allocation5], %s1133_s18  ;;  %s1966_s26 = scalar_lea.sflag [#allocation3], %s334_s29 }
  0x87   : > { %s1964_s25 = sshll.u32 %s359_s23, 4  ;;  %p1564_p9 = pneg %p1955_p11  ;;  %s1998_s25 = int_to_ptr.vmem [resolvable:$true] %s1964_s25 }
  0x89   : > { %s1951_s19 = scalar_lea.hbm %s2161_s0, %s1191_s16  ;;  %s1567_s20 = scalar_lea.hbm %s2161_s0, 512 }
  0x8a   : > { %s1562_s24 = scalar_lea.hbm %s1951_s19, 256  ;;  %p1568_p1 = scmp.lt.u32.totalorder %s1951_s19, %s2161_s0 }
  0x8b   : > { %p1563_p7 = scmp.ne.s32.totalorder %s1951_s19, %s1562_s24  ;;  %p1569_p2 = scmp.lt.u32.totalorder %s1567_s20, %s1562_s24 }
  0x8c   : > { %p1571_p4 = scmp.lt.u32.totalorder %s1562_s24, %s1951_s19 }
  0x8d   : > { %p1565_p12 = pnand %p1564_p9, %p1563_p7  ;;  %p1570_p13 = por %p1569_p2, %p1568_p1 }
  0x8f   : > { %p1566_p0 = pneg %p1565_p12  ;;  %p1572_p8 = por %p1571_p4, %p1570_p13 }
  0x91   : > { %p1573_p6 = pnand %p1572_p8, %p1566_p0 }
  0x93   : > { %1576 = shalt.err (!%p1573_p6)
}
  0x94   : > { %s1577_s29 = scalar_lea.vmem %s1953_s22, 256  ;;  %s1712_s2 = smov [#allocation2]  }
  0x95   : > { %p1578_p3 = scmp.ne.s32.totalorder %s1953_s22, %s1577_s29  ;;  %s1582_s3 = sshll.u32 %s1712_s2, 4  ;;  %s1583_s3 = int_to_ptr.vmem [resolvable:$false] %s1582_s3 }
  0x96   : > { %s1584_s18 = scalar_lea.vmem %s1583_s3, 512  ;;  %p1585_p12 = scmp.lt.s32.totalorder %s1953_s22, %s1583_s3 }
  0x97   : > { %p1580_p5 = pnand %p1578_p3, %p1564_p9  ;;  %p1586_p1 = scmp.lt.s32.totalorder %s1584_s18, %s1577_s29 }
  0x99   : > { %p1581_p7 = pneg %p1580_p5  ;;  %p1587_p2 = por %p1586_p1, %p1585_p12 }
  0x9b   : > { %p1588_p13 = pnand %p1587_p2, %p1581_p7 }
  0x9d   : > { %1591 = shalt.err (!%p1588_p13)
}
  0x9e   : > { %s2163_s23 = smov 4   ;;  %s2164_s24 = smov 64  }
  0x9f   : > { %1356 = dma.hbm_to_vmem [thread:$0]  (!%p1955_p11), %s1951_s19, 256, %s1953_s22, %s1966_s26, %s2164_s24, %s2164_s24, %s2163_s23  }
  0xa0   : > { %s355_s20 = sand.u32 1, %s1704_s12   ;;  %s1592_s16 = scalar_lea.hbm %s1962_s21, 256 }
  0xa1   : > { %s2001_s30 = scalar_lea.sflag [#allocation6], %s355_s20  ;;  %p1593_p0 = scmp.ne.s32.totalorder %s1962_s21, %s1592_s16 }
  0xa2   : > { %s1597_s3 = scalar_lea.hbm %s2127_s1, 512  ;;  %p1598_p6 = scmp.lt.u32.totalorder %s1962_s21, %s2127_s1 }
  0xa3   : > { %p1595_p4 = pnand %p1593_p0, %p1564_p9  ;;  %p1599_p3 = scmp.lt.u32.totalorder %s1597_s3, %s1592_s16 }
  0xa4   : > { %p1601_p7 = scmp.lt.u32.totalorder %s1592_s16, %s1962_s21 }
  0xa5   : > { %p1596_p8 = pneg %p1595_p4  ;;  %p1600_p5 = por %p1599_p3, %p1598_p6 }
  0xa7   : > { %p1602_p12 = por %p1601_p7, %p1600_p5 }
  0xa9   : > { %p1603_p1 = pnand %p1602_p12, %p1596_p8 }
  0xab   : > { %1606 = shalt.err (!%p1603_p1)
}
  0xac   : > { %s1607_s26 = scalar_lea.vmem %s1998_s25, 256  ;;  %s1713_s19 = smov [#allocation5]  }
  0xad   : > { %p1608_p2 = scmp.ne.s32.totalorder %s1998_s25, %s1607_s26  ;;  %s1612_s22 = sshll.u32 %s1713_s19, 4  ;;  %s1613_s22 = int_to_ptr.vmem [resolvable:$false] %s1612_s22 }
  0xae   : > { %s1614_s0 = scalar_lea.vmem %s1613_s22, 512  ;;  %p1615_p4 = scmp.lt.s32.totalorder %s1998_s25, %s1613_s22 }
  0xaf   : > { %p1610_p13 = pnand %p1608_p2, %p1564_p9  ;;  %p1616_p6 = scmp.lt.s32.totalorder %s1614_s0, %s1607_s26 }
  0xb1   : > { %p1611_p0 = pneg %p1610_p13  ;;  %p1617_p3 = por %p1616_p6, %p1615_p4 }
  0xb3   : > { %p1618_p5 = pnand %p1617_p3, %p1611_p0 }
  0xb5   : > { %1621 = shalt.err (!%p1618_p5)
}
  0xb6   : > { %1359 = dma.hbm_to_vmem [thread:$0]  (!%p1955_p11), %s1962_s21, 256, %s1998_s25, %s2001_s30, %s2164_s24, %s2164_s24, %s2163_s23  }
  0xb7   : > { %p2165_p9 = scmp.ne.s32.totalorder %s2154_s17, 0 }
  0xb8   : > { %s2033_s20 = sand.u32 (!%p2165_p9), 1, %s1696_s10   ;;  %p2166_p8 = scmp.ne.s32.totalorder (!%p2165_p9), %s2151_s15, 0 }
  0xb9   : > { %378 = sbr.rel (%p2165_p9) target bundleno = 947 (0x3b3), region = 56  ;;  %s1140_s16 = sshll.u32 (!%p2165_p9), %s2033_s20, 4 }
  0xba   : > { %s381_s29 = scalar_lea.sflag (!%p2165_p9), [#allocation3], %s2033_s20  ;;  %s2037_s2 = scalar_lea.vmem (!%p2165_p9), [#allocation2], %s1140_s16 }
  0xc0   : > { %1667 = dma.done.wait (%p2166_p8), %s381_s29, 256  }
  0xc1   : > { %1669 = vsyncadd (%p2166_p8), %s381_s29, 4294967040  ;;  %s389_s25 = sand.u32 1, %s1788_s13   ;;  %s2044_s9 = scalar_lea.vmem [#allocation5], %s1140_s16 }
  0xc2   : > { %s390_s17 = scalar_lea.sflag [#allocation6], %s389_s25 }
  0xc3   : > { %1671 = dma.done.wait (%p2166_p8), %s390_s17, 256  }
  0xc4   : > { %1673 = vsyncadd (%p2166_p8), %s390_s17, 4294967040  ;;  %p2167_p11 = scmp.eq.s32.totalorder %s1788_s13, 0 }
  0xc6   : > { %1675 = dma.done.wait (%p2167_p11), [#allocation6], 1024   ;;  %p2168_p7 = pmov %p2167_p11 }
  0xc8   : > { %1677 = vsyncadd (%p2168_p7), [#allocation6], 4294966272  ;;  %p2169_p12 = pmov %p2168_p7 }
  0xc9   : > { %p2170_p1 = pmov %p2168_p7 }
  0xca   : > { %1679 = dma.done.wait (%p2169_p12), [#allocation9], 2048  }
  0xcb   : > { %1681 = vsyncadd (%p2170_p1), [#allocation9], 4294965248  ;;  %p2171_p2 = pmov %p2170_p1 }
  0xcc   : > { %p2172_p13 = pmov %p2170_p1 }
  0xcd   : > { %1683 = dma.done.wait (%p2171_p2), [#allocation12], 1024  }
  0xce   : > { %1685 = vsyncadd (%p2172_p13), [#allocation12], 4294966272  ;;  %v1414_v0 = vld [vmem:[#allocation8] sm:$0xff]   ;;  %v1415_v1 = vld [vmem:[#allocation8 + $0x8] sm:$0xff]   ;;  %s1146_s30 = sshll.u32 %s2033_s20, 5  ;;  %s1193_s22 = sshll.u32 %s1788_s13, 9 }
  0xcf   : > { %1234 = vmatprep.subr.bf16.mxu0 %v1414_v0  ;;  %v1416_v2 = vld [vmem:[#allocation8 + $0x10] sm:$0xff]   ;;  %v1417_v3 = vld [vmem:[#allocation8 + $0x18] sm:$0xff]   ;;  %v1418_v5 = vld [vmem:[#allocation8 + $0x20] sm:$0xff]   ;;  %s448_s26 = scalar_lea.vmem [#allocation13], %s1146_s30  ;;  %s2173_s29 = sld [smem:[#allocation25_spill]] }
  0xd0   : > { %1235 = vmatpush3.bf16.msra.mxu0 %v1414_v0  ;;  %v1422_v4 = vld [vmem:[%s2044_s9] sm:$0xff]   ;;  %v1419_v6 = vld [vmem:[#allocation8 + $0x28] sm:$0xff]   ;;  %v1421_v10 = vld [vmem:[#allocation8 + $0x38] sm:$0xff]   ;;  %s992_s19 = sshll.u32 %s448_s26, 4  ;;  %s979_s13 = scalar_lea.sflag [#allocation4], %s2033_s20  ;;  %s2077_s19 = int_to_ptr.vmem [resolvable:$true] %s992_s19 }
  0xd1   : > { %1236 = vmatprep.subr.bf16.mxu0 %v1415_v1  ;;  %1250 = vmatprep.mubr.bf16.mxu0 %v1422_v4  ;;  %v1420_v7 = vld [vmem:[#allocation8 + $0x30] sm:$0xff]   ;;  %v1434_v8 = vld [vmem:[#allocation10] sm:$0xff]   ;;  %v1435_v9 = vld [vmem:[#allocation10 + $0x8] sm:$0xff]   ;;  %s1622_s25 = scalar_lea.vmem %s2077_s19, 512  ;;  %s1714_s17 = smov [#allocation13]  }
  0xd2   : > { %1274 = vmatprep.subr.bf16.mxu1 %v1434_v8  ;;  %v1436_v11 = vld [vmem:[#allocation10 + $0x10] sm:$0xff]   ;;  %v1423_v12 = vld [vmem:[#allocation7] sm:$0xff]   ;;  %v1437_v13 = vld [vmem:[#allocation10 + $0x18] sm:$0xff]   ;;  %p1623_p0 = scmp.ne.s32.totalorder %s2077_s19, %s1622_s25 }
  0xd3   : > { %1275 = vmatpush3.bf16.msra.mxu1 %v1434_v8  ;;  %v1424_v14 = vld [vmem:[%s2044_s9 + $0x8] sm:$0xff]   ;;  %v1432_v15 = vld [vmem:[%s2037_s2] sm:$0xff]   ;;  %s1626_s9 = sshll.u32 %s1714_s17, 4  ;;  %s1627_s9 = int_to_ptr.vmem [resolvable:$false] %s1626_s9 }
  0xd4   : > { %1237 = vmatpush3.bf16.msra.mxu0 %v1415_v1  ;;  %1276 = vmatprep.subr.bf16.mxu1 %v1435_v9  ;;  %v1425_v16 = vld [vmem:[#allocation7 + $0x8] sm:$0xff]   ;;  %v1438_v17 = vld [vmem:[#allocation10 + $0x20] sm:$0xff]   ;;  %v1426_v18 = vld [vmem:[#allocation7 + $0x10] sm:$0xff]   ;;  %p1624_p4 = pnand %p1623_p0, %p1938_p10  ;;  %s1628_s15 = scalar_lea.vmem %s1627_s9, 1024 }
  0xd5   : > { %1238 = vmatprep.subr.bf16.mxu0 %v1416_v2  ;;  %v1439_v19 = vld [vmem:[#allocation10 + $0x28] sm:$0xff]   ;;  %v1427_v20 = vld [vmem:[#allocation7 + $0x18] sm:$0xff]   ;;  %v1428_v21 = vld [vmem:[#allocation7 + $0x20] sm:$0xff]   ;;  %p1629_p3 = scmp.lt.s32.totalorder %s2077_s19, %s1627_s9  ;;  %p1630_p5 = scmp.lt.s32.totalorder %s1628_s15, %s1622_s25 }
  0xd6   : > { %v1429_v22 = vld [vmem:[#allocation7 + $0x28] sm:$0xff]   ;;  %v1430_v23 = vld [vmem:[#allocation7 + $0x30] sm:$0xff]   ;;  %v1431_v24 = vld [vmem:[#allocation7 + $0x38] sm:$0xff]   ;;  %p1625_p6 = pneg %p1624_p4 }
  0xd7   : > { %1277 = vmatpush3.bf16.msra.mxu1 %v1435_v9  ;;  %v1433_v25 = vld [vmem:[%s2037_s2 + $0x8] sm:$0xff]   ;;  %v1440_v26 = vld [vmem:[#allocation10 + $0x30] sm:$0xff]   ;;  %v1442_v28 = vld [vmem:[#allocation11] sm:$0xff]   ;;  %s2082_s2 = scalar_lea.hbm %s2173_s29, %s1193_s22  ;;  %p1631_p9 = por %p1630_p5, %p1629_p3 }
  0xd8   : > { %1239 = vmatpush3.bf16.msra.mxu0 %v1416_v2  ;;  %1278 = vmatprep.subr.bf16.mxu1 %v1436_v11  ;;  %v1441_v27 = vld [vmem:[#allocation10 + $0x38] sm:$0xff]   ;;  %v1167_v29 = vld [vmem:[%s2130_s4] ss:$0 sm:$0xff]  ;;  %v1443_v44 = vld [vmem:[#allocation11 + $0x8] sm:$0xff]  }
  0xd9   : > { %1240 = vmatprep.subr.bf16.mxu0 %v1417_v3  ;;  %v1444_v45 = vld [vmem:[#allocation11 + $0x10] sm:$0xff]   ;;  %v1445_v46 = vld [vmem:[#allocation11 + $0x18] sm:$0xff]   ;;  %v1446_v47 = vld [vmem:[#allocation11 + $0x20] sm:$0xff]   ;;  %p1632_p8 = pnand %p1631_p9, %p1625_p6 }
  0xda   : > { %v1447_v48 = vld [vmem:[#allocation11 + $0x28] sm:$0xff]   ;;  %v1448_v49 = vld [vmem:[#allocation11 + $0x30] sm:$0xff]   ;;  %v1449_v50 = vld [vmem:[#allocation11 + $0x38] sm:$0xff]  }
  0xdb   : > { %1279 = vmatpush3.bf16.msra.mxu1 %v1436_v11  ;;  %v1168_v51 = vld [vmem:[%s2132_s6] ss:$0 sm:$0xff] }
  0xdc   : > { %1241 = vmatpush3.bf16.msra.mxu0 %v1417_v3  ;;  %1280 = vmatprep.subr.bf16.mxu1 %v1437_v13  ;;  %v1177_v2 = vld [vmem:[%s2134_s8] ss:$0 sm:$0xff] }
  0xdd   : > { %1242 = vmatprep.subr.bf16.mxu0 %v1418_v5 }
  0xdf   : > { %1281 = vmatpush3.bf16.msra.mxu1 %v1437_v13 }
  0xe0   : > { %1243 = vmatpush3.bf16.msra.mxu0 %v1418_v5  ;;  %1282 = vmatprep.subr.bf16.mxu1 %v1438_v17 }
  0xe1   : > { %1244 = vmatprep.subr.bf16.mxu0 %v1419_v6 }
  0xe3   : > { %1283 = vmatpush3.bf16.msra.mxu1 %v1438_v17 }
  0xe4   : > { %1245 = vmatpush3.bf16.msra.mxu0 %v1419_v6  ;;  %1284 = vmatprep.subr.bf16.mxu1 %v1439_v19 }
  0xe5   : > { %1246 = vmatprep.subr.bf16.mxu0 %v1420_v7 }
  0xe7   : > { %1285 = vmatpush3.bf16.msra.mxu1 %v1439_v19 }
  0xe8   : > { %1247 = vmatpush3.bf16.msra.mxu0 %v1420_v7  ;;  %1286 = vmatprep.subr.bf16.mxu1 %v1440_v26 }
  0xe9   : > { %1248 = vmatprep.subr.bf16.mxu0 %v1421_v10 }
  0xeb   : > { %1287 = vmatpush3.bf16.msra.mxu1 %v1440_v26 }
  0xec   : > { %1249 = vmatpush3.bf16.msra.mxu0 %v1421_v10  ;;  %1288 = vmatprep.subr.bf16.mxu1 %v1441_v27 }
  0xed   : > { %1254 = vmatprep.subr.bf16.mxu0 %v1423_v12 }
  0xef   : > { %1251 = vmatmul.mubr.bf16.vlgmr.msra.gmra.mrb[0].mxu0 %v1424_v14  ;;  %1289 = vmatpush3.bf16.msra.mxu1 %v1441_v27 }
  0xf0   : > { %1255 = vmatpush3.bf16.msra.mxu0 %v1423_v12  ;;  %1270 = vmatprep.mubr.bf16.mxu0 %v1432_v15 }
  0xf1   : > { %1256 = vmatprep.subr.bf16.mxu0 %v1425_v16  ;;  %1294 = vmatprep.subr.bf16.mxu1 %v1442_v28 }
  0xf4   : > { %1257 = vmatpush3.bf16.msra.mxu0 %v1425_v16 }
  0xf5   : > { %1258 = vmatprep.subr.bf16.mxu0 %v1426_v18 }
  0xf8   : > { %1259 = vmatpush3.bf16.msra.mxu0 %v1426_v18 }
  0xf9   : > { %1260 = vmatprep.subr.bf16.mxu0 %v1427_v20 }
  0xfc   : > { %1261 = vmatpush3.bf16.msra.mxu0 %v1427_v20 }
  0xfd   : > { %1262 = vmatprep.subr.bf16.mxu0 %v1428_v21 }
 0x100   : > { %1263 = vmatpush3.bf16.msra.mxu0 %v1428_v21 }
 0x101   : > { %1264 = vmatprep.subr.bf16.mxu0 %v1429_v22 }
 0x104   : > { %1265 = vmatpush3.bf16.msra.mxu0 %v1429_v22 }
 0x105   : > { %1266 = vmatprep.subr.bf16.mxu0 %v1430_v23 }
 0x108   : > { %1267 = vmatpush3.bf16.msra.mxu0 %v1430_v23 }
 0x109   : > { %1268 = vmatprep.subr.bf16.mxu0 %v1431_v24 }
 0x10c   : > { %1269 = vmatpush3.bf16.msra.mxu0 %v1431_v24 }
 0x10f   : > { %1271 = vmatmul.mubr.bf16.vlgmr.msra.gmra.mrb[0].mxu0 %v1433_v25 }
 0x1e2   : > { %v1272_v30 = vpop.f32.mrb[0].mxu0 }
 0x1e3   : > { %v720_v31 = vadd.f32 %v1272_v30, %v1167_v29  ;;  %v696_v32 = vpop.f32.mrb[1].mxu0 }
 0x1e4   : > { %v718_v33 = vadd.f32 %v1167_v29, %v696_v32  ;;  %v1273_v34 = vpop.f32.mrb[2].mxu0 }
 0x1e5   : > { %v721_v35 = vadd.f32 %v1273_v34, %v1167_v29  ;;  %v699_v36 = vpop.f32.mrb[3].mxu0  ;;  %v724_v38 = vmax.f32 %v720_v31, 0.0 }
 0x1e6   : > { %v719_v37 = vadd.f32 %v1167_v29, %v699_v36  ;;  %v722_v40 = vmax.f32 %v718_v33, 0.0 }
 0x1e7   : > { %v725_v39 = vmax.f32 %v721_v35, 0.0 }
 0x1e8   : > { %v723_v41 = vmax.f32 %v719_v37, 0.0 }
 0x1e9   : > { %v727_v42 = vpack.c.bf16 %v725_v39, %v724_v38 }
 0x1ea   : > { %v726_v43 = vpack.c.bf16 %v723_v41, %v722_v40 }
 0x1ec   : > { %1290 = vmatprep.mubr.bf16.mxu1 %v726_v43 }
 0x1ed   : > { %1291 = vmatmul.mubr.bf16.vlgmr.msra.gmra.mrb[0].mxu1 %v727_v42 }
 0x1ee   : > { %1295 = vmatpush3.bf16.msra.mxu1 %v1442_v28 }
 0x1ef   : > { %1296 = vmatprep.subr.bf16.mxu1 %v1443_v44 }
 0x1f2   : > { %1297 = vmatpush3.bf16.msra.mxu1 %v1443_v44 }
 0x1f3   : > { %1298 = vmatprep.subr.bf16.mxu1 %v1444_v45 }
 0x1f6   : > { %1299 = vmatpush3.bf16.msra.mxu1 %v1444_v45 }
 0x1f7   : > { %1300 = vmatprep.subr.bf16.mxu1 %v1445_v46 }
 0x1fa   : > { %1301 = vmatpush3.bf16.msra.mxu1 %v1445_v46 }
 0x1fb   : > { %1302 = vmatprep.subr.bf16.mxu1 %v1446_v47 }
 0x1fe   : > { %1303 = vmatpush3.bf16.msra.mxu1 %v1446_v47 }
 0x1ff   : > { %1304 = vmatprep.subr.bf16.mxu1 %v1447_v48 }
 0x202   : > { %1305 = vmatpush3.bf16.msra.mxu1 %v1447_v48 }
 0x203   : > { %1306 = vmatprep.subr.bf16.mxu1 %v1448_v49 }
 0x206   : > { %1307 = vmatpush3.bf16.msra.mxu1 %v1448_v49 }
 0x207   : > { %1308 = vmatprep.subr.bf16.mxu1 %v1449_v50 }
 0x20a   : > { %1309 = vmatpush3.bf16.msra.mxu1 %v1449_v50 }
 0x2c0   : > { %v1292_v52 = vpop.f32.mrb[0].mxu1 }
 0x2c1   : > { %v842_v53 = vadd.f32 %v1292_v52, %v1168_v51  ;;  %v833_v54 = vpop.f32.mrb[1].mxu1 }
 0x2c2   : > { %v834_v55 = vadd.f32 %v1168_v51, %v833_v54  ;;  %v1293_v56 = vpop.f32.mrb[2].mxu1 }
 0x2c3   : > { %v845_v57 = vadd.f32 %v1293_v56, %v1168_v51  ;;  %v836_v58 = vpop.f32.mrb[3].mxu1  ;;  %v850_v60 = vmax.f32 %v842_v53, 0.0 }
 0x2c4   : > { %v837_v59 = vadd.f32 %v1168_v51, %v836_v58  ;;  %v848_v62 = vmax.f32 %v834_v55, 0.0 }
 0x2c5   : > { %v851_v61 = vmax.f32 %v845_v57, 0.0 }
 0x2c6   : > { %v849_v63 = vmax.f32 %v837_v59, 0.0 }
 0x2c7   : > { %v853_v0 = vpack.c.bf16 %v851_v61, %v850_v60 }
 0x2c8   : > { %v852_v1 = vpack.c.bf16 %v849_v63, %v848_v62 }
 0x2ca   : > { %1310 = vmatprep.mubr.bf16.mxu1 %v852_v1 }
 0x2cb   : > { %1311 = vmatmul.mubr.bf16.vlgmr.msra.gmra.mrb[4].mxu1 %v853_v0 }
 0x39e   : > { %v1312_v3 = vpop.f32.mrb[4].mxu1 }
 0x39f   : > { %v968_v4 = vadd.f32 %v1312_v3, %v1177_v2  ;;  %v959_v5 = vpop.f32.mrb[5].mxu1 }
 0x3a0   : > { %v960_v6 = vadd.f32 %v1177_v2, %v959_v5  ;;  %v1313_v7 = vpop.f32.mrb[6].mxu1 }
 0x3a1   : > { %976 = vst [vmem:[%s448_s26 + $0x10] sm:$0xff] %v968_v4  ;;  %v971_v8 = vadd.f32 %v1313_v7, %v1177_v2  ;;  %v962_v9 = vpop.f32.mrb[7].mxu1 }
 0x3a2   : > { %974 = vst [vmem:[%s448_s26] sm:$0xff] %v960_v6  ;;  %v963_v10 = vadd.f32 %v1177_v2, %v962_v9 }
 0x3a3   : > { %977 = vst [vmem:[%s448_s26 + $0x18] sm:$0xff] %v971_v8 }
 0x3a4   : > { %975 = vst [vmem:[%s448_s26 + $0x8] sm:$0xff] %v963_v10 }
 0x3a5   : > { %1635 = shalt.err (!%p1632_p8)
}
 0x3a6   : > { %s1636_s21 = scalar_lea.hbm %s2082_s2, 512  ;;  %s1640_s30 = scalar_lea.hbm %s2173_s29, 1024 }
 0x3a7   : > { %p1637_p11 = scmp.ne.s32.totalorder %s2082_s2, %s1636_s21  ;;  %p1641_p1 = scmp.lt.u32.totalorder %s2082_s2, %s2173_s29 }
 0x3a8   : > { %p1642_p2 = scmp.lt.u32.totalorder %s1640_s30, %s1636_s21  ;;  %p1644_p0 = scmp.lt.u32.totalorder %s1636_s21, %s2082_s2 }
 0x3a9   : > { %p1638_p7 = pnand %p1637_p11, %p1938_p10 }
 0x3aa   : > { %p1643_p13 = por %p1642_p2, %p1641_p1 }
 0x3ab   : > { %p1639_p12 = pneg %p1638_p7 }
 0x3ac   : > { %p1645_p4 = por %p1644_p0, %p1643_p13 }
 0x3ae   : > { %p1646_p6 = pnand %p1645_p4, %p1639_p12 }
 0x3b0   : > { %1649 = shalt.err (!%p1646_p6)
}
 0x3b1   : > { %s1715_s26 = smov 128   ;;  %s1716_s22 = smov 8  }
 0x3b2   : > { %1338 = dma.vmem_to_hbm [thread:$0]  (%p1938_p10), %s2077_s19, 512, %s2082_s2, %s979_s13, %s1715_s26, %s1715_s26, %s1716_s22  }
 0x3b3 PF: > { %s2174_s0 = sld [smem:[#allocation20_spill]]  ;;  %s2175_s16 = sld [smem:[#allocation21_spill]] }
 0x3b4   : > { %p2177_p5 = scmp.ge.s32.totalorder %s1704_s12, 2 }
 0x3b9   : > { %s1007_s25 = sand.u32 1, %s2174_s0   ;;  %p2176_p3 = scmp.ne.s32.totalorder %s2175_s16, 0 }
 0x3ba   : > { %s1008_s17 = scalar_lea.sflag [#allocation4], %s1007_s25 }
 0x3bb   : > { %p1361_p9 = pnand %p2177_p5, %p2176_p3 }
 0x3bd   : > { %1687 = dma.done.wait (!%p1361_p9), %s1008_s17, 512  }
 0x3be   : > { %1689 = vsyncadd (!%p1361_p9), %s1008_s17, 4294966784  ;;  %p27_p8 = scmp.ge.s32.totalorder %s1928_s14, 4   ;;  %s2178_s30 = smov %s1696_s10 }
 0x3bf   : > { %s2179_s10 = smov %s1700_s11  ;;  %s2180_s11 = smov %s1944_s28 }
 0x3c0   : > { %s2181_s12 = smov %s1928_s14  ;;  %29 = sbr.rel (!%p27_p8) target bundleno = 14 (0xe), region = 130 }
 0x3c7   :  { %1013 = vsyncpa [#allocation3], 1 }
 0x3c8   :  { %1015 = vsyncpa [#allocation3 + $0x1], 1 }
 0x3c9   :  { %1016 = vsyncpa [#allocation6], 1 }
 0x3ca   :  { %1018 = vsyncpa [#allocation6 + $0x1], 1 }
 0x3cb   :  { %1019 = vsyncpa [#allocation9], 1 }
 0x3cc   :  { %1020 = vsyncpa [#allocation12], 1 }
 0x3cd   :  { %1021 = vsyncpa [#allocation4], 1 }
 0x3ce   :  { %1023 = vsyncpa [#allocation4 + $0x1], 1 }

</bundles_post_ra>
